<compile_context>
chip_gen: v6e
topology: v6e:2x2x1
jax: 0.10.0
libtpu: 0.0.40
codegen_flags: <defaults>
</compile_context>

<pallas_src>
import jax
import jax.numpy as jnp
from jax.experimental import pallas as pl
from jax.experimental.pallas import tpu as pltpu


def half_ds_kernel(x_ref, w1_ref, b1_ref, w2_ref, b2_ref, o_ref):
    # x_ref : (1, 9*Cin, M)   im2col'd, transposed (lane dim = M)
    # w1_ref: (Cmid, 9*Cin)   conv1 weights, one K-folded matmul
    # b1_ref: (Cmid, 1)       conv1 bias (broadcast along lanes)
    # w2_ref: (Cmid, 1)       1x1 conv weights as a column
    # b2_ref: (1, 1)          1x1 conv bias
    # o_ref : (1, 1, M)       output, lane-dense (M = H*W)
    x = x_ref[0]                                                  # (9*Cin, M)
    h = jnp.dot(w1_ref[...], x, preferred_element_type=jnp.float32)  # (Cmid, M)
    h = jnp.maximum(h + b1_ref[...], 0.0)                         # bias + ReLU (f32 VPU)
    # 1x1 conv to a single channel: weighted sublane reduction (no tiny matmul).
    y = jnp.sum(h * w2_ref[...].astype(jnp.float32), axis=0, keepdims=True)
    y = y + b2_ref[...].astype(jnp.float32)                       # (1, M)
    o_ref[0] = y.astype(o_ref.dtype)


def half_ds_layer(x, w1, b1, w2, b2, use_bf16_mxu=False):
    """Fused half_DSLayer forward.

    x : (N, Cin, H, W)  NCHW (PyTorch layout)
    w1: (Cmid, Cin, 3, 3) OIHW, b1: (Cmid,)   -- enlayer conv (3x3, pad=1)
    w2: (1, Cmid, 1, 1)  OIHW, b2: (1,)       -- predlayer conv (1x1)
    returns (N, 1, H, W)
    """
    N, Cin, H, W = x.shape
    Cmid = w1.shape[0]
    M = H * W
    K = 9 * Cin

    # ---- layout plumbing (XLA side): zero-pad + transposed im2col ----------
    xp = jnp.pad(x, ((0, 0), (0, 0), (1, 1), (1, 1)))             # (N, Cin, H+2, W+2)
    cols = [xp[:, :, ky:ky + H, kx:kx + W].reshape(N, Cin, M)
            for ky in range(3) for kx in range(3)]
    x_cols = jnp.concatenate(cols, axis=1)                        # (N, 9*Cin, M)

    # weight row k = (ky*3+kx)*Cin + c  matches the im2col concat order above
    w1t = jnp.transpose(w1, (0, 2, 3, 1)).reshape(Cmid, K)        # (Cmid, 9*Cin)
    b1c = b1.reshape(Cmid, 1).astype(jnp.float32)
    w2c = w2.reshape(Cmid, 1)
    b2c = b2.reshape(1, 1).astype(jnp.float32)

    if use_bf16_mxu:  # v6e/v7x: bf16 MXU operands, f32 accumulate
        x_cols = x_cols.astype(jnp.bfloat16)
        w1t = w1t.astype(jnp.bfloat16)

    cost = pl.CostEstimate(
        flops=2 * N * M * (K * Cmid + Cmid),
        transcendentals=0,
        bytes_accessed=4 * (N * K * M + Cmid * K + 2 * Cmid + 1 + N * M),
    )

    out = pl.pallas_call(
        half_ds_kernel,
        out_shape=jax.ShapeDtypeStruct((N, 1, M), jnp.float32),
        grid_spec=pltpu.PrefetchScalarGridSpec(
            num_scalar_prefetch=0,
            grid=(N,),
            in_specs=[
                pl.BlockSpec((1, K, M), lambda n: (n, 0, 0)),
                pl.BlockSpec((Cmid, K), lambda n: (0, 0)),
                pl.BlockSpec((Cmid, 1), lambda n: (0, 0)),
                pl.BlockSpec((Cmid, 1), lambda n: (0, 0)),
                pl.BlockSpec((1, 1), lambda n: (0, 0)),
            ],
            out_specs=pl.BlockSpec((1, 1, M), lambda n: (n, 0, 0)),
        ),
        compiler_params=pltpu.CompilerParams(
            dimension_semantics=("parallel",)),
        cost_estimate=cost,
    )(x_cols, w1t, b1c, w2c, b2c)

    return out.reshape(N, 1, H, W)


def _reference(x, w1, b1, w2, b2):
    """Pure-JAX reference matching the PyTorch module exactly (NCHW / OIHW)."""
    y = jax.lax.conv_general_dilated(
        x, w1, window_strides=(1, 1), padding=((1, 1), (1, 1)),
        dimension_numbers=("NCHW", "OIHW", "NCHW"))
    y = y + b1.reshape(1, -1, 1, 1)
    y = jnp.maximum(y, 0.0)
    y = jax.lax.conv_general_dilated(
        y, w2, window_strides=(1, 1), padding="VALID",
        dimension_numbers=("NCHW", "OIHW", "NCHW"))
    return y + b2.reshape(1, -1, 1, 1)


if __name__ == "__main__":
    # small shapes consistent with the module: in_channel divisible by 4
    N, Cin, H, W = 2, 64, 16, 16
    Cmid = Cin // 4                      # int(in_channel / 4)

    key = jax.random.PRNGKey(0)
    kx, kw1, kb1, kw2, kb2 = jax.random.split(key, 5)

    x = jax.random.normal(kx, (N, Cin, H, W), dtype=jnp.float32)
    w1 = jax.random.normal(kw1, (Cmid, Cin, 3, 3), dtype=jnp.float32) * 0.1
    b1 = jax.random.normal(kb1, (Cmid,), dtype=jnp.float32) * 0.01
    w2 = jax.random.normal(kw2, (1, Cmid, 1, 1), dtype=jnp.float32) * 0.1
    b2 = jax.random.normal(kb2, (1,), dtype=jnp.float32) * 0.01

    out = jax.block_until_ready(half_ds_layer(x, w1, b1, w2, b2))
    ref = jax.block_until_ready(_reference(x, w1, b1, w2, b2))

    assert out.shape == (N, 1, H, W), out.shape
    err = jnp.max(jnp.abs(out - ref))
    assert jnp.allclose(out, ref, atol=1e-3, rtol=1e-3), f"max err {err}"

    print("KERNEL_OK")
</pallas_src>

<mosaic_0001>
module attributes {stable_mosaic.version = 11 : i64} {
  func.func @half_ds_kernel(%arg0: i32, %arg1: memref<1x576x256xf32, #tpu.memory_space<vmem>>, %arg2: memref<16x576xf32, #tpu.memory_space<vmem>>, %arg3: memref<16x1xf32, #tpu.memory_space<vmem>>, %arg4: memref<16x1xf32, #tpu.memory_space<vmem>>, %arg5: memref<1x1xf32, #tpu.memory_space<vmem>>, %arg6: memref<1x1x256xf32, #tpu.memory_space<vmem>>) attributes {dimension_semantics = [#tpu.dimension_semantics<parallel>], iteration_bounds = array<i64: 2>, scalar_prefetch = 0 : i64, scratch_operands = 0 : i64, tpu.core_type = #tpu.core_type<tc>, window_params = [{transform_indices = @transform_0, window_bounds = array<i64: 1, 576, 256>}, {pipeline_mode = #tpu.pipeline_mode<synchronous>, transform_indices = @transform_1, window_bounds = array<i64: 16, 576>}, {pipeline_mode = #tpu.pipeline_mode<synchronous>, transform_indices = @transform_2, window_bounds = array<i64: 16, 1>}, {pipeline_mode = #tpu.pipeline_mode<synchronous>, transform_indices = @transform_3, window_bounds = array<i64: 16, 1>}, {pipeline_mode = #tpu.pipeline_mode<synchronous>, transform_indices = @transform_4, window_bounds = array<i64: 1, 1>}, {transform_indices = @transform_5, window_bounds = array<i64: 1, 1, 256>}]} {
    %c0 = arith.constant 0 : index
    %c0_0 = arith.constant 0 : index
    %c0_1 = arith.constant 0 : index
    %0 = vector.load %arg1[%c0, %c0_0, %c0_1] : memref<1x576x256xf32, #tpu.memory_space<vmem>>, vector<1x576x256xf32>
    %1 = vector.shape_cast %0 : vector<1x576x256xf32> to vector<576x256xf32>
    %c0_2 = arith.constant 0 : index
    %c0_3 = arith.constant 0 : index
    %2 = vector.load %arg2[%c0_2, %c0_3] : memref<16x576xf32, #tpu.memory_space<vmem>>, vector<16x576xf32>
    %cst = arith.constant dense<0.000000e+00> : vector<16x256xf32>
    %3 = tpu.matmul %2, %1, %cst {dimension_numbers = #tpu.dot_dimension_numbers<[1], [0], [0], [1], [0, 0, 1, 1], [], []>} : vector<16x576xf32>, vector<576x256xf32>, vector<16x256xf32> -> vector<16x256xf32>
    %c0_4 = arith.constant 0 : index
    %c0_5 = arith.constant 0 : index
    %4 = vector.load %arg3[%c0_4, %c0_5] : memref<16x1xf32, #tpu.memory_space<vmem>>, vector<16x1xf32>
    %5 = vector.broadcast %4 : vector<16x1xf32> to vector<16x256xf32>
    %6 = arith.addf %3, %5 : vector<16x256xf32>
    %cst_6 = arith.constant 0.000000e+00 : f32
    %7 = vector.broadcast %cst_6 : f32 to vector<16x256xf32>
    %8 = arith.maximumf %6, %7 : vector<16x256xf32>
    %c0_7 = arith.constant 0 : index
    %c0_8 = arith.constant 0 : index
    %9 = vector.load %arg4[%c0_7, %c0_8] : memref<16x1xf32, #tpu.memory_space<vmem>>, vector<16x1xf32>
    %10 = vector.broadcast %9 : vector<16x1xf32> to vector<16x256xf32>
    %11 = arith.mulf %8, %10 : vector<16x256xf32>
    %cst_9 = arith.constant dense<0.000000e+00> : vector<256xf32>
    %12 = vector.multi_reduction <add>, %11, %cst_9 [0] : vector<16x256xf32> to vector<256xf32>
    %13 = vector.shape_cast %12 : vector<256xf32> to vector<1x256xf32>
    %c0_10 = arith.constant 0 : index
    %c0_11 = arith.constant 0 : index
    %14 = vector.load %arg5[%c0_10, %c0_11] : memref<1x1xf32, #tpu.memory_space<vmem>>, vector<1x1xf32>
    %15 = vector.broadcast %14 : vector<1x1xf32> to vector<1x256xf32>
    %16 = arith.addf %13, %15 : vector<1x256xf32>
    %c0_12 = arith.constant 0 : index
    %c0_13 = arith.constant 0 : index
    %c0_14 = arith.constant 0 : index
    %17 = vector.load %arg6[%c0_12, %c0_13, %c0_14] : memref<1x1x256xf32, #tpu.memory_space<vmem>>, vector<1x1x256xf32>
    %18 = vector.shape_cast %17 : vector<1x1x256xf32> to vector<1x256xf32>
    %19 = vector.shape_cast %16 : vector<1x256xf32> to vector<1x1x256xf32>
    tpu.vector_store %arg6[%c0_12, %c0_13, %c0_14], %19 {strides = array<i32>} : memref<1x1x256xf32, #tpu.memory_space<vmem>>, vector<1x1x256xf32>,
    return
  }
  func.func @transform_0(%arg0: i32) -> (i32, i32, i32) {
    %c0_i32 = arith.constant 0 : i32
    %c0_i32_0 = arith.constant 0 : i32
    %c0_i32_1 = arith.constant 0 : i32
    return %arg0, %c0_i32, %c0_i32_0 : i32, i32, i32
  }
  func.func @transform_1(%arg0: i32) -> (i32, i32) {
    %c0_i32 = arith.constant 0 : i32
    %c0_i32_0 = arith.constant 0 : i32
    %c0_i32_1 = arith.constant 0 : i32
    return %c0_i32, %c0_i32_0 : i32, i32
  }
  func.func @transform_2(%arg0: i32) -> (i32, i32) {
    %c0_i32 = arith.constant 0 : i32
    %c0_i32_0 = arith.constant 0 : i32
    %c0_i32_1 = arith.constant 0 : i32
    return %c0_i32, %c0_i32_0 : i32, i32
  }
  func.func @transform_3(%arg0: i32) -> (i32, i32) {
    %c0_i32 = arith.constant 0 : i32
    %c0_i32_0 = arith.constant 0 : i32
    %c0_i32_1 = arith.constant 0 : i32
    return %c0_i32, %c0_i32_0 : i32, i32
  }
  func.func @transform_4(%arg0: i32) -> (i32, i32) {
    %c0_i32 = arith.constant 0 : i32
    %c0_i32_0 = arith.constant 0 : i32
    %c0_i32_1 = arith.constant 0 : i32
    return %c0_i32, %c0_i32_0 : i32, i32
  }
  func.func @transform_5(%arg0: i32) -> (i32, i32, i32) {
    %c0_i32 = arith.constant 0 : i32
    %c0_i32_0 = arith.constant 0 : i32
    %c0_i32_1 = arith.constant 0 : i32
    return %arg0, %c0_i32, %c0_i32_0 : i32, i32, i32
  }
}

</mosaic_0001>

<bundles_post_ra>
// kernel: tpu_custom_call.1
= control target key start
LH: loop header
LB: loop body
LE: loop exit
PB: predicated region body
PF: predicated region fallthrough
CT: control target
= control target key end

     0   :  { %s1418_s0 = inlined_call_operand.hbm [shape: f32[2,576,256], index: 0, kind: input, shape index: {}]   ;;  %s1419_s1 = inlined_call_operand.hbm [shape: f32[16,576], index: 1, kind: input, shape index: {}]   ;;  %s1420_s2 = inlined_call_operand.vmem [shape: f32[16,1], index: 2, kind: input, shape index: {}]   ;;  %s1421_s3 = inlined_call_operand.vmem [shape: f32[16,1], index: 3, kind: input, shape index: {}]   ;;  %s1422_s4 = inlined_call_operand.<no memory space> [shape: f32[1,1], index: 4, kind: input, shape index: {}]   ;;  %s1423_s5 = inlined_call_operand.hbm [shape: f32[2,1,256], index: 5, kind: output, shape index: {}]  }
   0x1   :  { %v10_v0 = vstv %s1422_s4 }
   0x2   :  { %11 = vst [vmem:[#allocation2] sm:$0x1] %v10_v0 }
   0x3   :  { %12 = vsyncpa [#allocation4], 0 }
   0x4   :  { %14 = vsyncpa [#allocation4 + $0x1], 0 }
   0x5   :  { %15 = vsyncpa [#allocation7], 0 }
   0x6   :  { %16 = vsyncpa [#allocation5], 0 }
   0x7   :  { %18 = vsyncpa [#allocation5 + $0x1], 0  ;;  %s1096_s20 = smov 0   ;;  %s1098_s21 = smov 0  }
   0x8   :  { %s1100_s22 = smov 0   ;;  %s1102_s23 = smov 0  }
   0x9 LB: > { %s1117_s4 = sadd.s32 4294967295, %s1051_s23   ;;  %s828_s24 = sadd.s32 4294967294, %s1051_s23   ;;  %s1051_s23 = sphi %s1102_s23, %s1445_s23   ;;  %s1047_s22 = sphi %s1100_s22, %s1444_s22   ;;  %s1043_s21 = sphi %s1098_s21, %s1443_s21   ;;  %s1039_s20 = sphi %s1096_s20, %s1442_s20  }
   0xa   : > { %p44_p0 = scmp.ne.s32.totalorder %s1043_s21, %s1039_s20  ;;  %p1424_p1 = scmp.eq.s32.totalorder %s1117_s4, 0 }
   0xb   : > { %p158_p3 = scmp.eq.s32.totalorder %s828_s24, 1  ;;  %p829_p5 = scmp.ge.s32.totalorder %s1051_s23, 1 }
   0xc   : > { %p1126_p4 = por %p1424_p1, %p44_p0  ;;  %p165_p7 = scmp.lt.s32.totalorder %s1051_s23, 3 }
   0xd   : > { %p1131_p6 = por %p158_p3, %p44_p0  ;;  %s1053_s28 = smov [#allocation6]  }
   0xe   : > { %s1428_s25 = scalar_select %p1126_p4, 1, 0 }
   0xf   : > { %s1429_s26 = scalar_select %p1131_p6, 1, 0 }
  0x10   : > { %p1136_p8 = pnand %p829_p5, %p165_p7  ;;  %s177_s29 = sshll.u32 %s1053_s28, 4  ;;  %s178_s29 = int_to_ptr.vmem [resolvable:$true] %s177_s29 }
  0x11   : > { %s1150_s6 = sadd.s32 1, %s1051_s23   ;;  %s31_s7 = sadd.s32 1, %s1047_s22 }
  0x12   : > { %s1430_s27 = scalar_select %p1136_p8, 1, 0 }
  0x13   : > { %p871_p9 = pneg %p1136_p8  ;;  %s28_s8 = ssub.s32 %s1051_s23, %s1150_s6 }
  0x14   : > { %s940_s9 = scalar_lea.vmem %s178_s29, 1280  ;;  %p948_p5 = scmp.lt.s32.totalorder %s178_s29, %s178_s29 }
  0x15   : > { %p1145_p11 = pnand %p871_p9, %p1424_p1  ;;  %p941_p13 = scmp.ne.s32.totalorder %s178_s29, %s940_s9 }
  0x16   : > { %p949_p7 = scmp.lt.s32.totalorder %s940_s9, %s940_s9 }
  0x17   : > { %p931_p12 = pneg %p1145_p11 }
  0x18   : > { %p950_p10 = por %p949_p7, %p948_p5 }
  0x19   : > { %p943_p0 = pnand %p941_p13, %p931_p12 }
  0x1b   : > { %p944_p3 = pneg %p943_p0 }
  0x1d   : > { %p951_p2 = pnand %p950_p10, %p944_p3 }
  0x1f   : > { %954 = shalt.err (!%p951_p2)
}
  0x20   : > { %s1054_s10 = smov 640   ;;  %s1055_s11 = smov 40  }
  0x21   : > { %874 = dma.hbm_to_vmem [thread:$0]  (!%p1145_p11), %s1419_s1, 1280, %s178_s29, [#allocation7], %s1054_s10, %s1054_s10, %s1055_s11  }
  0x22   : > { %p29_p9 = scmp.eq.s32.totalorder %s28_s8, 0  ;;  %p38_p12 = scmp.ne.s32.totalorder %s1047_s22, %s1043_s21 }
  0x23   : > { %p39_p10 = scmp.eq.s32.totalorder %s1051_s23, 0  ;;  %p884_p2 = scmp.lt.s32.totalorder %s1051_s23, 2 }
  0x24   : > { %s1167_s14 = scalar_select %p29_p9, %s1047_s22, %s31_s7  }
  0x25   : > { %p40_p13 = por %p39_p10, %p38_p12  ;;  %p1432_p0 = scmp.eq.s32.totalorder %s1117_s4, 1 }
  0x26   : > { %s200_s16 = sand.u32 1, %s1047_s22   ;;  %s861_s17 = smul.u32 18432, %s1051_s23 }
  0x27   : > { %p1171_p3 = por %p1432_p0, %p38_p12  ;;  %s860_s18 = smul.u32 1152, %s200_s16 }
  0x28   : > { %s1180_s28 = scalar_lea.hbm %s1418_s0, %s861_s17  ;;  %p1182_p11 = pnand %p884_p2, %p40_p13 }
  0x29   : > { %s1433_s15 = scalar_select %p1171_p3, 1, 0 }
  0x2a   : > { %s204_s30 = scalar_lea.vmem [#allocation3], %s860_s18  ;;  %s1188_s8 = scalar_lea.sflag [#allocation4], %s200_s16 }
  0x2b   : > { %s211_s7 = sshll.u32 %s204_s30, 4  ;;  %s955_s9 = scalar_lea.hbm %s1180_s28, 18432  ;;  %s1186_s7 = int_to_ptr.vmem [resolvable:$true] %s211_s7 }
  0x2c   : > { %p956_p5 = scmp.ne.s32.totalorder %s1180_s28, %s955_s9  ;;  %p957_p7 = pneg %p1182_p11 }
  0x2d   : > { %s960_s12 = scalar_lea.hbm %s1418_s0, 36864  ;;  %p961_p10 = scmp.lt.s32.totalorder %s1180_s28, %s1418_s0 }
  0x2e   : > { %p958_p9 = pnand %p957_p7, %p956_p5  ;;  %p962_p2 = scmp.lt.s32.totalorder %s960_s12, %s955_s9 }
  0x30   : > { %p959_p12 = pneg %p958_p9  ;;  %p963_p13 = por %p962_p2, %p961_p10 }
  0x32   : > { %p964_p0 = pnand %p963_p13, %p959_p12 }
  0x34   : > { %967 = shalt.err (!%p964_p0)
}
  0x35   : > { %s968_s16 = scalar_lea.vmem %s1186_s7, 18432  ;;  %s1056_s18 = smov [#allocation3]  }
  0x36   : > { %p969_p1 = scmp.ne.s32.totalorder %s1186_s7, %s968_s16  ;;  %s973_s19 = sshll.u32 %s1056_s18, 4  ;;  %s974_s19 = int_to_ptr.vmem [resolvable:$false] %s973_s19 }
  0x37   : > { %s975_s24 = scalar_lea.vmem %s974_s19, 36864  ;;  %p976_p9 = scmp.lt.s32.totalorder %s1186_s7, %s974_s19 }
  0x38   : > { %p971_p6 = pnand %p969_p1, %p957_p7  ;;  %p977_p3 = scmp.lt.s32.totalorder %s975_s24, %s968_s16 }
  0x3a   : > { %p972_p5 = pneg %p971_p6  ;;  %p978_p4 = por %p977_p3, %p976_p9 }
  0x3c   : > { %p979_p8 = pnand %p978_p4, %p972_p5 }
  0x3e   : > { %982 = shalt.err (!%p979_p8)
}
  0x3f   : > { %s1057_s30 = smov 256   ;;  %s1058_s9 = smov 16  }
  0x40   : > { %878 = dma.hbm_to_vmem [thread:$0]  (!%p1182_p11), %s1180_s28, 18432, %s1186_s7, %s1188_s8, %s1057_s30, %s1057_s30, %s1058_s9  }
  0x41   : > { %p1435_p1 = scmp.ne.s32.totalorder %s1430_s27, 0 }
  0x42   : > { %s1212_s10 = sand.u32 (!%p1435_p1), 1, %s1043_s21   ;;  %p1436_p4 = scmp.ne.s32.totalorder (!%p1435_p1), %s1428_s25, 0 }
  0x43   : > { %223 = sbr.rel (%p1435_p1) target bundleno = 399 (0x18f), region = 40  ;;  %s226_s12 = scalar_lea.sflag (!%p1435_p1), [#allocation4], %s1212_s10 }
  0x44   : > { %s862_s11 = smul.u32 (!%p1435_p1), 1152, %s1212_s10 }
  0x46   : > { %s1216_s13 = scalar_lea.vmem (!%p1435_p1), [#allocation3], %s862_s11 }
  0x48   : > { %1026 = dma.done.wait (%p1436_p4), %s226_s12, 18432  }
  0x49   : > { %1028 = vsyncadd (%p1436_p4), %s226_s12, 4294948864  ;;  %p1437_p6 = scmp.eq.s32.totalorder %s1117_s4, 0 }
  0x4b   : > { %1030 = dma.done.wait (%p1437_p6), [#allocation7], 1280   ;;  %p1438_p8 = pmov %p1437_p6 }
  0x4c   : > { %v1059_v1 = vmov 0   ;;  %v291_v2 = vld [vmem:[%s1216_s13 + $0xf8] sm:$0xff]  ;;  %v290_v4 = vld [vmem:[%s1216_s13 + $0xf0] sm:$0xff]  ;;  %v289_v6 = vld [vmem:[%s1216_s13 + $0xe8] sm:$0xff]  ;;  %vm426_vm0 = vcmask 523264   ;;  %s835_s18 = sshll.u32 %s1212_s10, 1 }
  0x4d   : > { %1032 = vsyncadd (%p1438_p8), [#allocation7], 4294966016  ;;  %927 = vset.pattern.permute.xlu0 %v1059_v1  ;;  %928 = vset.pattern.permute.xlu1 %v1059_v1  ;;  %v355_v3 = vld [vmem:[%s1216_s13 + $0x2f8] sm:$0xff]  ;;  %v354_v5 = vld [vmem:[%s1216_s13 + $0x2f0] sm:$0xff]  ;;  %s843_s19 = sshll.u32 %s1117_s4, 5  ;;  %s259_s24 = scalar_lea.vmem [#allocation8], %s835_s18 }
  0x4e   : > { %433 = vmatprep.subr.mxu0 %v291_v2  ;;  %510 = vmatprep.subr.mxu1 %v355_v3  ;;  %v353_v7 = vld [vmem:[%s1216_s13 + $0x2e8] sm:$0xff]  ;;  %v288_v8 = vld [vmem:[%s1216_s13 + $0xe0] sm:$0xff]  ;;  %v287_v10 = vld [vmem:[%s1216_s13 + $0xd8] sm:$0xff]  ;;  %s748_s30 = sshll.u32 %s259_s24, 4  ;;  %s746_s12 = scalar_lea.hbm %s1423_s5, %s843_s19  ;;  %s749_s30 = int_to_ptr.vmem [resolvable:$true] %s748_s30 }
  0x4f   : > { %434 = vmatpush1.msra.mxu0 %v290_v4  ;;  %511 = vmatpush1.msra.mxu1 %v354_v5  ;;  %v352_v9 = vld [vmem:[%s1216_s13 + $0x2e0] sm:$0xff]  ;;  %v351_v11 = vld [vmem:[%s1216_s13 + $0x2d8] sm:$0xff]  ;;  %v286_v12 = vld [vmem:[%s1216_s13 + $0xd0] sm:$0xff]  ;;  %s983_s25 = scalar_lea.vmem %s749_s30, 32  ;;  %p1439_p11 = scmp.ne.s32.totalorder %s1433_s15, 0 }
  0x50   : > { %435 = vmatprep.subr.mxu0 %v289_v6  ;;  %512 = vmatprep.subr.mxu1 %v353_v7  ;;  %v350_v13 = vld [vmem:[%s1216_s13 + $0x2d0] sm:$0xff]  ;;  %v285_v14 = vld [vmem:[%s1216_s13 + $0xc8] sm:$0xff]  ;;  %v284_v16 = vld [vmem:[%s1216_s13 + $0xc0] sm:$0xff]  ;;  %p984_p3 = scmp.ne.s32.totalorder %s749_s30, %s983_s25  ;;  %s1062_s27 = smov [#allocation8]  }
  0x51   : > { %436 = vmatpush1.msra.mxu0 %v288_v8  ;;  %513 = vmatpush1.msra.mxu1 %v352_v9  ;;  %v349_v15 = vld [vmem:[%s1216_s13 + $0x2c8] sm:$0xff]  ;;  %v348_v17 = vld [vmem:[%s1216_s13 + $0x2c0] sm:$0xff]  ;;  %v283_v18 = vld [vmem:[%s1216_s13 + $0xb8] sm:$0xff]  ;;  %s987_s28 = sshll.u32 %s1062_s27, 4  ;;  %s988_s28 = int_to_ptr.vmem [resolvable:$false] %s987_s28 }
  0x52   : > { %437 = vmatprep.subr.mxu0 %v287_v10  ;;  %514 = vmatprep.subr.mxu1 %v351_v11  ;;  %v347_v19 = vld [vmem:[%s1216_s13 + $0x2b8] sm:$0xff]  ;;  %v282_v20 = vld [vmem:[%s1216_s13 + $0xb0] sm:$0xff]  ;;  %v281_v22 = vld [vmem:[%s1216_s13 + $0xa8] sm:$0xff]  ;;  %p985_p7 = pnand %p984_p3, %p1439_p11  ;;  %s989_s4 = scalar_lea.vmem %s988_s28, 64 }
  0x53   : > { %438 = vmatpush1.msra.mxu0 %v286_v12  ;;  %515 = vmatpush1.msra.mxu1 %v350_v13  ;;  %v346_v21 = vld [vmem:[%s1216_s13 + $0x2b0] sm:$0xff]  ;;  %v345_v23 = vld [vmem:[%s1216_s13 + $0x2a8] sm:$0xff]  ;;  %v280_v24 = vld [vmem:[%s1216_s13 + $0xa0] sm:$0xff]  ;;  %p990_p10 = scmp.lt.s32.totalorder %s749_s30, %s988_s28  ;;  %p991_p2 = scmp.lt.s32.totalorder %s989_s4, %s983_s25 }
  0x54   : > { %439 = vmatprep.subr.mxu0 %v285_v14  ;;  %516 = vmatprep.subr.mxu1 %v349_v15  ;;  %v344_v25 = vld [vmem:[%s1216_s13 + $0x2a0] sm:$0xff]  ;;  %v279_v26 = vld [vmem:[%s1216_s13 + $0x98] sm:$0xff]  ;;  %v278_v28 = vld [vmem:[%s1216_s13 + $0x90] sm:$0xff]  ;;  %p986_p12 = pneg %p985_p7 }
  0x55   : > { %440 = vmatpush1.msra.mxu0 %v284_v16  ;;  %517 = vmatpush1.msra.mxu1 %v348_v17  ;;  %v343_v27 = vld [vmem:[%s1216_s13 + $0x298] sm:$0xff]  ;;  %v342_v29 = vld [vmem:[%s1216_s13 + $0x290] sm:$0xff]  ;;  %v277_v30 = vld [vmem:[%s1216_s13 + $0x88] sm:$0xff]  ;;  %p992_p13 = por %p991_p2, %p990_p10 }
  0x56   : > { %441 = vmatprep.subr.mxu0 %v283_v18  ;;  %518 = vmatprep.subr.mxu1 %v347_v19  ;;  %v341_v31 = vld [vmem:[%s1216_s13 + $0x288] sm:$0xff]  ;;  %v276_v32 = vld [vmem:[%s1216_s13 + $0x80] sm:$0xff]  ;;  %v275_v34 = vld [vmem:[%s1216_s13 + $0x78] sm:$0xff] }
  0x57   : > { %442 = vmatpush1.msra.mxu0 %v282_v20  ;;  %519 = vmatpush1.msra.mxu1 %v346_v21  ;;  %v340_v33 = vld [vmem:[%s1216_s13 + $0x280] sm:$0xff]  ;;  %v339_v35 = vld [vmem:[%s1216_s13 + $0x278] sm:$0xff]  ;;  %v274_v36 = vld [vmem:[%s1216_s13 + $0x70] sm:$0xff]  ;;  %p993_p0 = pnand %p992_p13, %p986_p12 }
  0x58   : > { %443 = vmatprep.subr.mxu0 %v281_v22  ;;  %520 = vmatprep.subr.mxu1 %v345_v23  ;;  %v338_v37 = vld [vmem:[%s1216_s13 + $0x270] sm:$0xff]  ;;  %v273_v38 = vld [vmem:[%s1216_s13 + $0x68] sm:$0xff]  ;;  %v272_v40 = vld [vmem:[%s1216_s13 + $0x60] sm:$0xff] }
  0x59   : > { %444 = vmatpush1.msra.mxu0 %v280_v24  ;;  %521 = vmatpush1.msra.mxu1 %v344_v25  ;;  %v337_v39 = vld [vmem:[%s1216_s13 + $0x268] sm:$0xff]  ;;  %v336_v41 = vld [vmem:[%s1216_s13 + $0x260] sm:$0xff]  ;;  %v271_v42 = vld [vmem:[%s1216_s13 + $0x58] sm:$0xff] }
  0x5a   : > { %445 = vmatprep.subr.mxu0 %v279_v26  ;;  %522 = vmatprep.subr.mxu1 %v343_v27  ;;  %v335_v43 = vld [vmem:[%s1216_s13 + $0x258] sm:$0xff]  ;;  %v270_v44 = vld [vmem:[%s1216_s13 + $0x50] sm:$0xff]  ;;  %v269_v46 = vld [vmem:[%s1216_s13 + $0x48] sm:$0xff] }
  0x5b   : > { %446 = vmatpush1.msra.mxu0 %v278_v28  ;;  %523 = vmatpush1.msra.mxu1 %v342_v29  ;;  %v334_v45 = vld [vmem:[%s1216_s13 + $0x250] sm:$0xff]  ;;  %v333_v47 = vld [vmem:[%s1216_s13 + $0x248] sm:$0xff]  ;;  %v268_v48 = vld [vmem:[%s1216_s13 + $0x40] sm:$0xff] }
  0x5c   : > { %447 = vmatprep.subr.mxu0 %v277_v30  ;;  %524 = vmatprep.subr.mxu1 %v341_v31  ;;  %v332_v49 = vld [vmem:[%s1216_s13 + $0x240] sm:$0xff]  ;;  %v267_v50 = vld [vmem:[%s1216_s13 + $0x38] sm:$0xff]  ;;  %v266_v52 = vld [vmem:[%s1216_s13 + $0x30] sm:$0xff] }
  0x5d   : > { %448 = vmatpush1.msra.mxu0 %v276_v32  ;;  %525 = vmatpush1.msra.mxu1 %v340_v33  ;;  %v331_v51 = vld [vmem:[%s1216_s13 + $0x238] sm:$0xff]  ;;  %v330_v53 = vld [vmem:[%s1216_s13 + $0x230] sm:$0xff]  ;;  %v265_v54 = vld [vmem:[%s1216_s13 + $0x28] sm:$0xff] }
  0x5e   : > { %449 = vmatprep.subr.mxu0 %v275_v34  ;;  %526 = vmatprep.subr.mxu1 %v339_v35  ;;  %v329_v55 = vld [vmem:[%s1216_s13 + $0x228] sm:$0xff]  ;;  %v264_v56 = vld [vmem:[%s1216_s13 + $0x20] sm:$0xff]  ;;  %v263_v58 = vld [vmem:[%s1216_s13 + $0x18] sm:$0xff] }
  0x5f   : > { %450 = vmatpush1.msra.mxu0 %v274_v36  ;;  %527 = vmatpush1.msra.mxu1 %v338_v37  ;;  %v328_v57 = vld [vmem:[%s1216_s13 + $0x220] sm:$0xff]  ;;  %v327_v59 = vld [vmem:[%s1216_s13 + $0x218] sm:$0xff]  ;;  %v262_v60 = vld [vmem:[%s1216_s13 + $0x10] sm:$0xff] }
  0x60   : > { %451 = vmatprep.subr.mxu0 %v273_v38  ;;  %528 = vmatprep.subr.mxu1 %v337_v39  ;;  %v326_v61 = vld [vmem:[%s1216_s13 + $0x210] sm:$0xff]  ;;  %v261_v62 = vld [vmem:[%s1216_s13 + $0x8] sm:$0xff]  ;;  %v260_v0 = vld [vmem:[%s1216_s13] sm:$0xff] }
  0x61   : > { %452 = vmatpush1.msra.mxu0 %v272_v40  ;;  %529 = vmatpush1.msra.mxu1 %v336_v41  ;;  %v325_v63 = vld [vmem:[%s1216_s13 + $0x208] sm:$0xff]  ;;  %v324_v1 = vld [vmem:[%s1216_s13 + $0x200] sm:$0xff]  ;;  %v323_v2 = vld [vmem:[%s1216_s13 + $0x1f8] sm:$0xff] }
  0x62   : > { %453 = vmatprep.subr.mxu0 %v271_v42  ;;  %530 = vmatprep.subr.mxu1 %v335_v43  ;;  %v387_v3 = vld [vmem:[%s1216_s13 + $0x3f8] sm:$0xff]  ;;  %v322_v4 = vld [vmem:[%s1216_s13 + $0x1f0] sm:$0xff]  ;;  %v321_v6 = vld [vmem:[%s1216_s13 + $0x1e8] sm:$0xff] }
  0x63   : > { %454 = vmatpush1.msra.mxu0 %v270_v44  ;;  %531 = vmatpush1.msra.mxu1 %v334_v45  ;;  %v386_v5 = vld [vmem:[%s1216_s13 + $0x3f0] sm:$0xff]  ;;  %v385_v7 = vld [vmem:[%s1216_s13 + $0x3e8] sm:$0xff]  ;;  %v320_v8 = vld [vmem:[%s1216_s13 + $0x1e0] sm:$0xff] }
  0x64   : > { %455 = vmatprep.subr.mxu0 %v269_v46  ;;  %532 = vmatprep.subr.mxu1 %v333_v47  ;;  %v384_v9 = vld [vmem:[%s1216_s13 + $0x3e0] sm:$0xff]  ;;  %v319_v10 = vld [vmem:[%s1216_s13 + $0x1d8] sm:$0xff]  ;;  %v318_v12 = vld [vmem:[%s1216_s13 + $0x1d0] sm:$0xff] }
  0x65   : > { %456 = vmatpush1.msra.mxu0 %v268_v48  ;;  %533 = vmatpush1.msra.mxu1 %v332_v49  ;;  %v383_v11 = vld [vmem:[%s1216_s13 + $0x3d8] sm:$0xff]  ;;  %v382_v13 = vld [vmem:[%s1216_s13 + $0x3d0] sm:$0xff]  ;;  %v317_v14 = vld [vmem:[%s1216_s13 + $0x1c8] sm:$0xff] }
  0x66   : > { %457 = vmatprep.subr.mxu0 %v267_v50  ;;  %534 = vmatprep.subr.mxu1 %v331_v51  ;;  %v381_v15 = vld [vmem:[%s1216_s13 + $0x3c8] sm:$0xff]  ;;  %v316_v16 = vld [vmem:[%s1216_s13 + $0x1c0] sm:$0xff]  ;;  %v315_v18 = vld [vmem:[%s1216_s13 + $0x1b8] sm:$0xff] }
  0x67   : > { %458 = vmatpush1.msra.mxu0 %v266_v52  ;;  %535 = vmatpush1.msra.mxu1 %v330_v53  ;;  %v380_v17 = vld [vmem:[%s1216_s13 + $0x3c0] sm:$0xff]  ;;  %v379_v19 = vld [vmem:[%s1216_s13 + $0x3b8] sm:$0xff]  ;;  %v314_v20 = vld [vmem:[%s1216_s13 + $0x1b0] sm:$0xff] }
  0x68   : > { %459 = vmatprep.subr.mxu0 %v265_v54  ;;  %536 = vmatprep.subr.mxu1 %v329_v55  ;;  %v378_v21 = vld [vmem:[%s1216_s13 + $0x3b0] sm:$0xff]  ;;  %v313_v22 = vld [vmem:[%s1216_s13 + $0x1a8] sm:$0xff]  ;;  %v312_v24 = vld [vmem:[%s1216_s13 + $0x1a0] sm:$0xff] }
  0x69   : > { %460 = vmatpush1.msra.mxu0 %v264_v56  ;;  %537 = vmatpush1.msra.mxu1 %v328_v57  ;;  %v377_v23 = vld [vmem:[%s1216_s13 + $0x3a8] sm:$0xff]  ;;  %v376_v25 = vld [vmem:[%s1216_s13 + $0x3a0] sm:$0xff]  ;;  %v311_v26 = vld [vmem:[%s1216_s13 + $0x198] sm:$0xff] }
  0x6a   : > { %461 = vmatprep.subr.mxu0 %v263_v58  ;;  %538 = vmatprep.subr.mxu1 %v327_v59  ;;  %v375_v27 = vld [vmem:[%s1216_s13 + $0x398] sm:$0xff]  ;;  %v310_v28 = vld [vmem:[%s1216_s13 + $0x190] sm:$0xff]  ;;  %v309_v30 = vld [vmem:[%s1216_s13 + $0x188] sm:$0xff] }
  0x6b   : > { %462 = vmatpush1.msra.mxu0 %v262_v60  ;;  %539 = vmatpush1.msra.mxu1 %v326_v61  ;;  %v374_v29 = vld [vmem:[%s1216_s13 + $0x390] sm:$0xff]  ;;  %v373_v31 = vld [vmem:[%s1216_s13 + $0x388] sm:$0xff]  ;;  %v308_v32 = vld [vmem:[%s1216_s13 + $0x180] sm:$0xff] }
  0x6c   : > { %463 = vmatprep.subr.mxu0 %v261_v62  ;;  %540 = vmatprep.subr.mxu1 %v325_v63  ;;  %v372_v33 = vld [vmem:[%s1216_s13 + $0x380] sm:$0xff]  ;;  %v307_v34 = vld [vmem:[%s1216_s13 + $0x178] sm:$0xff]  ;;  %v306_v36 = vld [vmem:[%s1216_s13 + $0x170] sm:$0xff] }
  0x6d   : > { %464 = vmatpush1.msra.mxu0 %v260_v0  ;;  %541 = vmatpush1.msra.mxu1 %v324_v1  ;;  %v371_v35 = vld [vmem:[%s1216_s13 + $0x378] sm:$0xff]  ;;  %v370_v37 = vld [vmem:[%s1216_s13 + $0x370] sm:$0xff]  ;;  %v305_v38 = vld [vmem:[%s1216_s13 + $0x168] sm:$0xff] }
  0x6e   : > { %465 = vmatprep.subr.mxu0 %v323_v2  ;;  %542 = vmatprep.subr.mxu1 %v387_v3  ;;  %v369_v39 = vld [vmem:[%s1216_s13 + $0x368] sm:$0xff]  ;;  %v304_v40 = vld [vmem:[%s1216_s13 + $0x160] sm:$0xff]  ;;  %v303_v42 = vld [vmem:[%s1216_s13 + $0x158] sm:$0xff] }
  0x6f   : > { %466 = vmatpush2.msra.mxu0 %v322_v4  ;;  %543 = vmatpush2.msra.mxu1 %v386_v5  ;;  %v368_v41 = vld [vmem:[%s1216_s13 + $0x360] sm:$0xff]  ;;  %v367_v43 = vld [vmem:[%s1216_s13 + $0x358] sm:$0xff]  ;;  %v302_v44 = vld [vmem:[%s1216_s13 + $0x150] sm:$0xff] }
  0x70   : > { %467 = vmatprep.subr.mxu0 %v321_v6  ;;  %544 = vmatprep.subr.mxu1 %v385_v7  ;;  %v366_v45 = vld [vmem:[%s1216_s13 + $0x350] sm:$0xff]  ;;  %v301_v46 = vld [vmem:[%s1216_s13 + $0x148] sm:$0xff]  ;;  %v300_v48 = vld [vmem:[%s1216_s13 + $0x140] sm:$0xff] }
  0x71   : > { %468 = vmatpush2.msra.mxu0 %v320_v8  ;;  %545 = vmatpush2.msra.mxu1 %v384_v9  ;;  %v365_v47 = vld [vmem:[%s1216_s13 + $0x348] sm:$0xff]  ;;  %v364_v49 = vld [vmem:[%s1216_s13 + $0x340] sm:$0xff]  ;;  %v299_v50 = vld [vmem:[%s1216_s13 + $0x138] sm:$0xff] }
  0x72   : > { %469 = vmatprep.subr.mxu0 %v319_v10  ;;  %546 = vmatprep.subr.mxu1 %v383_v11  ;;  %v363_v51 = vld [vmem:[%s1216_s13 + $0x338] sm:$0xff]  ;;  %v298_v52 = vld [vmem:[%s1216_s13 + $0x130] sm:$0xff]  ;;  %v297_v54 = vld [vmem:[%s1216_s13 + $0x128] sm:$0xff] }
  0x73   : > { %470 = vmatpush2.msra.mxu0 %v318_v12  ;;  %547 = vmatpush2.msra.mxu1 %v382_v13  ;;  %v362_v53 = vld [vmem:[%s1216_s13 + $0x330] sm:$0xff]  ;;  %v361_v55 = vld [vmem:[%s1216_s13 + $0x328] sm:$0xff]  ;;  %v296_v56 = vld [vmem:[%s1216_s13 + $0x120] sm:$0xff] }
  0x74   : > { %471 = vmatprep.subr.mxu0 %v317_v14  ;;  %548 = vmatprep.subr.mxu1 %v381_v15  ;;  %v360_v57 = vld [vmem:[%s1216_s13 + $0x320] sm:$0xff]  ;;  %v295_v58 = vld [vmem:[%s1216_s13 + $0x118] sm:$0xff]  ;;  %v294_v60 = vld [vmem:[%s1216_s13 + $0x110] sm:$0xff] }
  0x75   : > { %472 = vmatpush2.msra.mxu0 %v316_v16  ;;  %549 = vmatpush2.msra.mxu1 %v380_v17  ;;  %v359_v59 = vld [vmem:[%s1216_s13 + $0x318] sm:$0xff]  ;;  %v358_v61 = vld [vmem:[%s1216_s13 + $0x310] sm:$0xff]  ;;  %v293_v62 = vld [vmem:[%s1216_s13 + $0x108] sm:$0xff] }
  0x76   : > { %473 = vmatprep.subr.mxu0 %v315_v18  ;;  %550 = vmatprep.subr.mxu1 %v379_v19  ;;  %v357_v63 = vld [vmem:[%s1216_s13 + $0x308] sm:$0xff]  ;;  %v292_v0 = vld [vmem:[%s1216_s13 + $0x100] sm:$0xff]  ;;  %v407_v3 = vld [vmem:[#allocation6 + $0x18] sm:$0xff] }
  0x77   : > { %474 = vmatpush2.msra.mxu0 %v314_v20  ;;  %551 = vmatpush2.msra.mxu1 %v378_v21  ;;  %v405_v1 = vld [vmem:[#allocation6 + $0x8] sm:$0xff]  ;;  %v356_v2 = vld [vmem:[%s1216_s13 + $0x300] sm:$0xff]  ;;  %v406_v5 = vld [vmem:[#allocation6 + $0x10] sm:$0xff] }
  0x78   : > { %475 = vmatprep.subr.mxu0 %v313_v22  ;;  %552 = vmatprep.subr.mxu1 %v377_v23  ;;  %v404_v4 = vld [vmem:[#allocation6] sm:$0xff]  ;;  %v403_v6 = vld [vmem:[%s1216_s13 + $0x478] sm:$0xff]  ;;  %v402_v7 = vld [vmem:[%s1216_s13 + $0x470] sm:$0xff] }
  0x79   : > { %476 = vmatpush2.msra.mxu0 %v312_v24  ;;  %553 = vmatpush2.msra.mxu1 %v376_v25  ;;  %v401_v8 = vld [vmem:[%s1216_s13 + $0x468] sm:$0xff]  ;;  %v400_v9 = vld [vmem:[%s1216_s13 + $0x460] sm:$0xff]  ;;  %v399_v10 = vld [vmem:[%s1216_s13 + $0x458] sm:$0xff] }
  0x7a   : > { %477 = vmatprep.subr.mxu0 %v311_v26  ;;  %554 = vmatprep.subr.mxu1 %v375_v27  ;;  %v398_v11 = vld [vmem:[%s1216_s13 + $0x450] sm:$0xff]  ;;  %v397_v12 = vld [vmem:[%s1216_s13 + $0x448] sm:$0xff]  ;;  %v396_v14 = vld [vmem:[%s1216_s13 + $0x440] sm:$0xff] }
  0x7b   : > { %478 = vmatpush2.msra.mxu0 %v310_v28  ;;  %555 = vmatpush2.msra.mxu1 %v374_v29  ;;  %v410_v13 = vld [vmem:[#allocation6 + $0x30] sm:$0xff]  ;;  %v409_v15 = vld [vmem:[#allocation6 + $0x28] sm:$0xff]  ;;  %v395_v16 = vld [vmem:[%s1216_s13 + $0x438] sm:$0xff] }
  0x7c   : > { %479 = vmatprep.subr.mxu0 %v309_v30  ;;  %556 = vmatprep.subr.mxu1 %v373_v31  ;;  %v412_v17 = vld [vmem:[#allocation6 + $0x40] sm:$0xff]  ;;  %v394_v18 = vld [vmem:[%s1216_s13 + $0x430] sm:$0xff]  ;;  %v393_v19 = vld [vmem:[%s1216_s13 + $0x428] sm:$0xff]  ;;  %v1060_v30 = vmov 0.0  }
  0x7d   : > { %480 = vmatpush2.msra.mxu0 %v308_v32  ;;  %557 = vmatpush2.msra.mxu1 %v372_v33  ;;  %v411_v20 = vld [vmem:[#allocation6 + $0x38] sm:$0xff]  ;;  %v392_v21 = vld [vmem:[%s1216_s13 + $0x420] sm:$0xff]  ;;  %v390_v23 = vld [vmem:[%s1216_s13 + $0x410] sm:$0xff] }
  0x7e   : > { %481 = vmatprep.subr.mxu0 %v307_v34  ;;  %558 = vmatprep.subr.mxu1 %v371_v35  ;;  %v391_v22 = vld [vmem:[%s1216_s13 + $0x418] sm:$0xff]  ;;  %v389_v24 = vld [vmem:[%s1216_s13 + $0x408] sm:$0xff]  ;;  %v388_v25 = vld [vmem:[%s1216_s13 + $0x400] sm:$0xff]  ;;  %s734_s13 = scalar_lea.sflag [#allocation5], %s1212_s10 }
  0x7f   : > { %482 = vmatpush2.msra.mxu0 %v306_v36  ;;  %559 = vmatpush2.msra.mxu1 %v370_v37  ;;  %v408_v26 = vld [vmem:[#allocation6 + $0x20] sm:$0xff]  ;;  %v413_v27 = vld [vmem:[#allocation6 + $0x48] sm:$0xff]  ;;  %v698_v33 = vld [vmem:[#allocation2] sm:$0x1] }
  0x80   : > { %483 = vmatprep.subr.mxu0 %v305_v38  ;;  %560 = vmatprep.subr.mxu1 %v369_v39  ;;  %v414_v28 = vld [vmem:[%s1420_s2] sm:$0xff]  ;;  %v415_v31 = vld [vmem:[%s1420_s2 + $0x8] sm:$0xff] }
  0x81   : > { %484 = vmatpush2.msra.mxu0 %v304_v40  ;;  %561 = vmatpush2.msra.mxu1 %v368_v41  ;;  %v668_v29 = vld [vmem:[%s1421_s3] sm:$0xff]  ;;  %v669_v32 = vld [vmem:[%s1421_s3 + $0x8] sm:$0xff] }
  0x82   : > { %485 = vmatprep.subr.mxu0 %v303_v42  ;;  %562 = vmatprep.subr.mxu1 %v367_v43 }
  0x83   : > { %486 = vmatpush2.msra.mxu0 %v302_v44  ;;  %563 = vmatpush2.msra.mxu1 %v366_v45 }
  0x84   : > { %487 = vmatprep.subr.mxu0 %v301_v46  ;;  %564 = vmatprep.subr.mxu1 %v365_v47 }
  0x85   : > { %488 = vmatpush2.msra.mxu0 %v300_v48  ;;  %565 = vmatpush2.msra.mxu1 %v364_v49 }
  0x86   : > { %489 = vmatprep.subr.mxu0 %v299_v50  ;;  %566 = vmatprep.subr.mxu1 %v363_v51 }
  0x87   : > { %490 = vmatpush2.msra.mxu0 %v298_v52  ;;  %567 = vmatpush2.msra.mxu1 %v362_v53 }
  0x88   : > { %491 = vmatprep.subr.mxu0 %v297_v54  ;;  %568 = vmatprep.subr.mxu1 %v361_v55 }
  0x89   : > { %492 = vmatpush2.msra.mxu0 %v296_v56  ;;  %569 = vmatpush2.msra.mxu1 %v360_v57 }
  0x8a   : > { %493 = vmatprep.subr.mxu0 %v295_v58  ;;  %570 = vmatprep.subr.mxu1 %v359_v59 }
  0x8b   : > { %494 = vmatpush2.msra.mxu0 %v294_v60  ;;  %571 = vmatpush2.msra.mxu1 %v358_v61 }
  0x8c   : > { %495 = vmatprep.subr.mxu0 %v293_v62  ;;  %572 = vmatprep.subr.mxu1 %v357_v63 }
  0x8d   : > { %496 = vmatpush2.msra.mxu0 %v292_v0  ;;  %497 = vmatprep.mubr.f32.mxu0 %v405_v1 }
  0x8e   : > { %573 = vmatpush2.msra.mxu1 %v356_v2  ;;  %574 = vmatprep.mubr.f32.mxu1 %v407_v3 }
  0x8f   : > { %498 = vmatmul.mubr.f32.vlgmr.msra.gmra.mxu0 %v404_v4  ;;  %575 = vmatmul.mubr.f32.vlgmr.msra.gmra.mxu1 %v406_v5 }
  0x90   : > { %603 = vmatprep.subr.mxu0 %v403_v6  ;;  %844 = vmatprep.subr.mxu1 %v403_v6 }
  0x91   : > { %604 = vmatpush1.msra.mxu0 %v402_v7  ;;  %852 = vmatpush1.msra.mxu1 %v402_v7  ;;  %v704_v7 = vlaneseq }
  0x92   : > { %605 = vmatprep.subr.mxu0 %v401_v8  ;;  %845 = vmatprep.subr.mxu1 %v401_v8 }
  0x93   : > { %606 = vmatpush1.msra.mxu0 %v400_v9  ;;  %853 = vmatpush1.msra.mxu1 %v400_v9  ;;  %vm730_vm1 = vcmp.lt.s32.totalorder %v704_v7, 256 }
  0x94   : > { %607 = vmatprep.subr.mxu0 %v399_v10  ;;  %846 = vmatprep.subr.mxu1 %v399_v10 }
  0x95   : > { %608 = vmatpush1.msra.mxu0 %v398_v11  ;;  %854 = vmatpush1.msra.mxu1 %v398_v11 }
  0x96   : > { %609 = vmatprep.subr.mxu0 %v397_v12  ;;  %847 = vmatprep.subr.mxu1 %v397_v12  ;;  %v705_v12 = vshrl.u32 %v704_v7, 7 }
  0x97   : > { %503 = vmatprep.mubr.f32.mxu0 %v410_v13  ;;  %610 = vmatpush1.msra.mxu0 %v396_v14 }
  0x98   : > { %855 = vmatpush1.msra.mxu1 %v396_v14  ;;  %504 = vmatmul.mubr.f32.gmra.mxu0 %v409_v15  ;;  %v1061_v15 = vmov 1966171168  }
  0x99   : > { %611 = vmatprep.subr.mxu0 %v395_v16  ;;  %848 = vmatprep.subr.mxu1 %v395_v16  ;;  %v714_v16 = vunpack.c.l.s4 %v1061_v15 }
  0x9a   : > { %580 = vmatprep.mubr.f32.mxu1 %v412_v17  ;;  %612 = vmatpush1.msra.mxu0 %v394_v18 }
  0x9b   : > { %856 = vmatpush1.msra.mxu1 %v394_v18  ;;  %613 = vmatprep.subr.mxu0 %v393_v19 }
  0x9c   : > { %581 = vmatmul.mubr.f32.gmra.mxu1 %v411_v20  ;;  %849 = vmatprep.subr.mxu1 %v393_v19  ;;  %v706_v19 = vsub.s32 0, %v705_v12 }
  0x9d   : > { %614 = vmatpush1.msra.mxu0 %v392_v21  ;;  %857 = vmatpush1.msra.mxu1 %v392_v21 }
  0x9e   : > { %615 = vmatprep.subr.mxu0 %v391_v22  ;;  %850 = vmatprep.subr.mxu1 %v391_v22 }
  0x9f   : > { %616 = vmatpush1.msra.mxu0 %v390_v23  ;;  %858 = vmatpush1.msra.mxu1 %v390_v23  ;;  %v715_v23 = vunpack.c.0.s8 %v714_v16 }
  0xa0   : > { %617 = vmatprep.subr.mxu0 %v389_v24  ;;  %851 = vmatprep.subr.mxu1 %v389_v24 }
  0xa1   : > { %618 = vmatpush1.msra.mxu0 %v388_v25  ;;  %859 = vmatpush1.msra.mxu1 %v388_v25 }
  0xa2   : > { %651 = vmatprep.mubr.f32.mxu0 %v1060_v30  ;;  %657 = vmatprep.mubr.f32.mxu1 %v1060_v30 }
  0xa3   : > { %836 = vmatmul.mubr.msk.f32.vlgmr.msra.gmra.mxu0 %vm426_vm0, %v408_v26  ;;  %837 = vmatmul.mubr.msk.f32.vlgmr.msra.gmra.mxu1 %vm426_vm0, %v413_v27 }
  0xa4   : > { %418 = vperm.xlu0 %927, %v414_v28   ;;  %672 = vperm.xlu1 %928, %v668_v29   ;;  %v718_v28 = vsub.s32 %v715_v23, %v705_v12 }
  0xa8   : > { %423 = vperm.xlu0 %927, %v415_v31   ;;  %677 = vperm.xlu1 %928, %v669_v32  }
  0xac   : > { %701 = vperm.xlu0 %927, %v698_v33  }
 0x11f   : > { %v419_v37 = vpop.permute.xlu0 %418  ;;  %v673_v48 = vpop.permute.xlu1 %672 }
 0x123   : > { %v424_v40 = vpop.permute.xlu0 %423  ;;  %v678_v63 = vpop.permute.xlu1 %677 }
 0x127   : > { %v702_v22 = vpop.permute.xlu0 %701 }
 0x128   : > { %v707_v26 = vrot.slane %v702_v22, %v706_v19 }
 0x14f   : > { %v499_v34 = vpop.f32.mrf.mxu0  ;;  %v576_v35 = vpop.f32.mrf.mxu1 }
 0x150   : > { %v500_v43 = vadd.f32 %v499_v34, %v419_v37 }
 0x151   : > { %v501_v36 = vpop.f32.mrf.mxu0  ;;  %v578_v39 = vpop.f32.mrf.mxu1 }
 0x152   : > { %v502_v45 = vadd.f32 %v501_v36, %v419_v37  ;;  %v577_v49 = vadd.f32 %v576_v35, %v500_v43 }
 0x154   : > { %v579_v53 = vadd.f32 %v578_v39, %v502_v45 }
 0x158   : > { %v505_v38 = vpop.f32.mrf.mxu0 }
 0x159   : > { %v506_v44 = vadd.f32 %v505_v38, %v424_v40 }
 0x15a   : > { %v507_v41 = vpop.f32.mrf.mxu0 }
 0x15b   : > { %v508_v46 = vadd.f32 %v507_v41, %v424_v40 }
 0x15c   : > { %v582_v42 = vpop.f32.mrf.mxu1 }
 0x15d   : > { %v583_v50 = vadd.f32 %v582_v42, %v506_v44 }
 0x15e   : > { %v584_v47 = vpop.f32.mrf.mxu1 }
 0x15f   : > { %v585_v54 = vadd.f32 %v584_v47, %v508_v46 }
 0x163   : > { %v653_v51 = vpop.f32.mrf.mxu0  ;;  %v659_v52 = vpop.f32.mrf.mxu1 }
 0x164   : > { %v654_v55 = vadd.f32 %v653_v51, %v577_v49  ;;  %v660_v56 = vadd.f32 %v659_v52, %v583_v50 }
 0x165   : > { %v655_v57 = vpop.f32.mrf.mxu0  ;;  %v661_v58 = vpop.f32.mrf.mxu1 }
 0x166   : > { %v664_v59 = vmax.f32 %v654_v55, 0.0  ;;  %v666_v60 = vmax.f32 %v660_v56, 0.0  ;;  %v656_v61 = vadd.f32 %v655_v57, %v579_v53  ;;  %v662_v62 = vadd.f32 %v661_v58, %v585_v54 }
 0x168   : > { %v680_v0 = vmul.f32 %v673_v48, %v664_v59  ;;  %v682_v1 = vmul.f32 %v678_v63, %v666_v60  ;;  %v665_v2 = vmax.f32 %v656_v61, 0.0  ;;  %v667_v3 = vmax.f32 %v662_v62, 0.0 }
 0x16a   : > { %v684_v4 = vadd.f32 %v682_v1, %v680_v0  ;;  %v681_v5 = vmul.f32 %v673_v48, %v665_v2  ;;  %v683_v6 = vmul.f32 %v678_v63, %v667_v3 }
 0x16c   : > { %v685_v8 = vrot.slane %v684_v4, 4  ;;  %v691_v9 = vadd.f32 %v683_v6, %v681_v5 }
 0x16e   : > { %v686_v10 = vadd.f32 %v685_v8, %v684_v4  ;;  %v692_v11 = vrot.slane %v691_v9, 4 }
 0x170   : > { %v687_v13 = vrot.slane %v686_v10, 2  ;;  %v693_v14 = vadd.f32 %v692_v11, %v691_v9 }
 0x172   : > { %v688_v17 = vadd.f32 %v687_v13, %v686_v10  ;;  %v694_v18 = vrot.slane %v693_v14, 2 }
 0x174   : > { %v689_v20 = vrot.slane %v688_v17, 1  ;;  %v695_v21 = vadd.f32 %v694_v18, %v693_v14 }
 0x176   : > { %v690_v24 = vadd.f32 %v689_v20, %v688_v17  ;;  %v696_v25 = vrot.slane %v695_v21, 1 }
 0x178   : > { %v697_v27 = vadd.f32 %v696_v25, %v695_v21  ;;  %v708_v29 = vadd.f32 %v707_v26, %v690_v24 }
 0x17a   : > { %v709_v30 = vadd.f32 %v707_v26, %v697_v27 }
 0x17c   : > { %v712_v31 = vcombine.low %v708_v29, %v709_v30 }
 0x17e   : > { %v719_v32 = vrot.slane %v712_v31, %v718_v28 }
 0x180   : > { %v726_v33 = vrot.slane %v719_v32, %v718_v28 }
 0x182   : > { %732 = vst.msk [vmem:[%s259_s24] sm:$0x3] %vm730_vm1, %v726_v33 }
 0x183   : > { %996 = shalt.err (!%p993_p0)
}
 0x184   : > { %s997_s29 = scalar_lea.hbm %s746_s12, 32  ;;  %s1001_s8 = scalar_lea.hbm %s1423_s5, 64 }
 0x185   : > { %p998_p5 = scmp.ne.s32.totalorder %s746_s12, %s997_s29  ;;  %p1002_p4 = scmp.lt.s32.totalorder %s746_s12, %s1423_s5 }
 0x186   : > { %p1003_p6 = scmp.lt.s32.totalorder %s1001_s8, %s997_s29 }
 0x187   : > { %p999_p9 = pnand %p998_p5, %p1439_p11 }
 0x188   : > { %p1004_p8 = por %p1003_p6, %p1002_p4 }
 0x189   : > { %p1000_p1 = pneg %p999_p9 }
 0x18b   : > { %p1005_p3 = pnand %p1004_p8, %p1000_p1 }
 0x18d   : > { %1008 = shalt.err (!%p1005_p3)
}
 0x18e   : > { %869 = dma.vmem_to_hbm [thread:$0]  (%p1439_p11), %s749_s30, 32, %s746_s12, %s734_s13  }
 0x18f PF: > { %s760_s18 = sand.u32 1, %s1039_s20   ;;  %p1440_p7 = scmp.ne.s32.totalorder %s1429_s26, 0 }
 0x190   : > { %p1441_p12 = scmp.ge.s32.totalorder %s1051_s23, 2  ;;  %s761_s19 = scalar_lea.sflag [#allocation5], %s760_s18 }
 0x192   : > { %p880_p10 = pnand %p1441_p12, %p1440_p7 }
 0x194   : > { %p881_p2 = pneg %p880_p10 }
 0x196   : > { %1034 = dma.done.wait (%p881_p2), %s761_s19, 32  }
 0x197   : > { %1036 = vsyncadd (%p881_p2), %s761_s19, 4294967264  ;;  %p21_p13 = scmp.ge.s32.totalorder %s1150_s6, 4   ;;  %s1442_s20 = smov %s1043_s21 }
 0x198   : > { %s1443_s21 = smov %s1047_s22  ;;  %s1444_s22 = smov %s1167_s14 }
 0x199   : > { %s1445_s23 = smov %s1150_s6  ;;  %23 = sbr.rel (!%p21_p13) target bundleno = 9 (0x9), region = 89 }
 0x19e   :  { %766 = vsyncpa [#allocation4], 1 }
 0x19f   :  { %768 = vsyncpa [#allocation4 + $0x1], 1 }
 0x1a0   :  { %769 = vsyncpa [#allocation7], 1 }
 0x1a1   :  { %770 = vsyncpa [#allocation5], 1 }
 0x1a2   :  { %772 = vsyncpa [#allocation5 + $0x1], 1 }

</bundles_post_ra>
